<compile_context>
chip_gen: v6e
topology: v6e:2x2x1
jax: 0.10.0
libtpu: 0.0.40
codegen_flags: <defaults>
</compile_context>

<pallas_src>
import functools

import jax
import jax.numpy as jnp
from jax import lax
from jax.experimental import pallas as pl
from jax.experimental.pallas import tpu as pltpu


# Contract the LAST dim of both operands (== x @ W.T for PyTorch-layout W)
# with no materialized transpose.
_CONTRACT_LAST = (((1,), (1,)), ((), ()))


def mha_kernel(x_ref, wq_ref, bq_ref, wk_ref, wv_ref, bv_ref, wo_ref, bo_ref,
               out_ref, qk_ref, *, n_head):
    x = x_ref[0]                                   # (S, D)
    S, D = x.shape
    hd = D // n_head
    scale = float(hd) ** -0.25
    in_dt = x.dtype

    # Linear projections (F.linear semantics: x @ W.T + b), f32 accumulation.
    q = lax.dot_general(x, wq_ref[...], _CONTRACT_LAST,
                        preferred_element_type=jnp.float32) + bq_ref[...]
    k = lax.dot_general(x, wk_ref[...], _CONTRACT_LAST,
                        preferred_element_type=jnp.float32)            # no bias
    v = lax.dot_general(x, wv_ref[...], _CONTRACT_LAST,
                        preferred_element_type=jnp.float32) + bv_ref[...]

    # Hoisted scaling: one full-width VPU pass each, not 2*H per-head ones.
    q = q * scale
    k = k * scale

    # Per-head attention; accumulate the output projection per head instead of
    # concatenating head outputs (no lane-shuffle concat, no (S, D) relayout).
    out = jnp.zeros((S, D), jnp.float32)
    for h in range(n_head):                        # static unroll, H is small
        sl = slice(h * hd, (h + 1) * hd)
        qh = q[:, sl].astype(in_dt)                # (S, hd), static lane slice
        kh = k[:, sl].astype(in_dt)
        vh = v[:, sl].astype(in_dt)

        # Scores: contract the hd axis of q and k directly (no kh.T).
        s = lax.dot_general(qh, kh, _CONTRACT_LAST,
                            preferred_element_type=jnp.float32)        # (S, S)
        qk_ref[0, h] = s.astype(qk_ref.dtype)

        # Softmax in f32: max-subtract + exp, then EUP approximate reciprocal
        # (+ one Newton step for full f32 accuracy) instead of a VPU divide.
        m = jnp.max(s, axis=-1, keepdims=True)
        p = jnp.exp(s - m)
        l = jnp.sum(p, axis=-1, keepdims=True)
        inv = pl.reciprocal(l, approx=True)
        inv = inv * (2.0 - l * inv)                # Newton refinement
        w = (p * inv).astype(in_dt)

        wv_h = jnp.dot(w, vh, preferred_element_type=jnp.float32)      # (S, hd)

        # This head's slice of the output projection: wv_h @ wo[:, sl].T,
        # again expressed as a last-dim contraction (no transpose).
        out = out + lax.dot_general(wv_h.astype(in_dt), wo_ref[:, sl],
                                    _CONTRACT_LAST,
                                    preferred_element_type=jnp.float32)

    out_ref[0] = (out + bo_ref[...]).astype(out_ref.dtype)


def multi_head_attention(x, params, n_head):
    B, S, D = x.shape
    assert D % n_head == 0
    kernel = functools.partial(mha_kernel, n_head=n_head)

    out_shape = (
        jax.ShapeDtypeStruct((B, S, D), x.dtype),               # self.out(wv)
        jax.ShapeDtypeStruct((B, n_head, S, S), jnp.float32),   # qk scores
    )

    # Weights / biases: whole-array, single copy resident in VMEM across the
    # whole grid (their index is constant) -- no per-step DMA, no 2x
    # double-buffer VMEM cost for four (D, D) weights.
    weight_spec = pl.BlockSpec(memory_space=pltpu.MemorySpace.VMEM)

    grid_spec = pltpu.PrefetchScalarGridSpec(
        num_scalar_prefetch=0,
        grid=(B,),
        in_specs=[
            pl.BlockSpec((1, S, D), lambda b: (b, 0, 0)),       # x
            weight_spec,                                        # W_q
            weight_spec,                                        # b_q
            weight_spec,                                        # W_k (no bias)
            weight_spec,                                        # W_v
            weight_spec,                                        # b_v
            weight_spec,                                        # W_out
            weight_spec,                                        # b_out
        ],
        out_specs=[
            pl.BlockSpec((1, S, D), lambda b: (b, 0, 0)),
            pl.BlockSpec((1, n_head, S, S), lambda b: (b, 0, 0, 0)),
        ],
    )

    # Explicit scoped-VMEM budget from the actual block / weight sizes
    # (defaults of 16/32 MiB are too small at real D, S), capped at v7x's
    # 64 MiB physical VMEM.
    itemsize = jnp.dtype(x.dtype).itemsize
    blocks = 2 * (2 * S * D * itemsize + n_head * S * S * 4)    # dbl-buffered x/out/qk
    weights = (4 * D * D + 3 * D) * itemsize
    work = (4 * S * D + 4 * S * S) * 4                          # q,k,v,acc + softmax tmp
    vmem_limit = int(min(max(2 * (blocks + weights + work), 32 * 1024 * 1024),
                         64 * 1024 * 1024))

    return pl.pallas_call(
        kernel,
        out_shape=out_shape,
        grid_spec=grid_spec,
        compiler_params=pltpu.CompilerParams(
            dimension_semantics=("parallel",),
            vmem_limit_bytes=vmem_limit,
        ),
    )(x, params["wq"], params["bq"], params["wk"], params["wv"],
      params["bv"], params["wo"], params["bo"])


def ref_mha(x, p, n_head):
    """Pure-JAX reference mirroring the PyTorch forward exactly."""
    B, S, D = x.shape
    hd = D // n_head
    scale = hd ** (-0.25)
    q = x @ p["wq"].T + p["bq"][0]
    k = x @ p["wk"].T
    v = x @ p["wv"].T + p["bv"][0]
    q = q.reshape(B, S, n_head, hd).transpose(0, 2, 1, 3) * scale
    k = k.reshape(B, S, n_head, hd).transpose(0, 2, 3, 1) * scale
    v = v.reshape(B, S, n_head, hd).transpose(0, 2, 1, 3)
    qk = q @ k
    w = jax.nn.softmax(qk, axis=-1)
    wv = (w @ v).transpose(0, 2, 1, 3).reshape(B, S, D)
    return wv @ p["wo"].T + p["bo"][0], qk


if __name__ == "__main__":
    B, S, D, H = 2, 8, 32, 4   # batch, n_ctx, n_state, n_head

    key = jax.random.PRNGKey(0)
    kx, kq, kk, kv, ko, kbq, kbv, kbo = jax.random.split(key, 8)
    x = jax.random.normal(kx, (B, S, D), dtype=jnp.float32)
    params = {
        "wq": jax.random.normal(kq, (D, D), dtype=jnp.float32) * 0.05,
        "bq": jax.random.normal(kbq, (1, D), dtype=jnp.float32) * 0.05,
        "wk": jax.random.normal(kk, (D, D), dtype=jnp.float32) * 0.05,
        "wv": jax.random.normal(kv, (D, D), dtype=jnp.float32) * 0.05,
        "bv": jax.random.normal(kbv, (1, D), dtype=jnp.float32) * 0.05,
        "wo": jax.random.normal(ko, (D, D), dtype=jnp.float32) * 0.05,
        "bo": jax.random.normal(kbo, (1, D), dtype=jnp.float32) * 0.05,
    }

    out, qk = multi_head_attention(x, params, H)
    out = jax.block_until_ready(out)
    qk = jax.block_until_ready(qk)

    out_ref, qk_ref = ref_mha(x, params, H)
    assert out.shape == (B, S, D) and qk.shape == (B, H, S, S)
    assert jnp.allclose(out, out_ref, atol=2e-4, rtol=2e-4)
    assert jnp.allclose(qk, qk_ref, atol=2e-4, rtol=2e-4)

    print("KERNEL_OK")
</pallas_src>

<mosaic_0001>
module attributes {stable_mosaic.version = 11 : i64} {
  func.func @mha_kernel(%arg0: i32, %arg1: memref<1x8x32xf32, #tpu.memory_space<vmem>>, %arg2: memref<32x32xf32, #tpu.memory_space<vmem>>, %arg3: memref<1x32xf32, #tpu.memory_space<vmem>>, %arg4: memref<32x32xf32, #tpu.memory_space<vmem>>, %arg5: memref<32x32xf32, #tpu.memory_space<vmem>>, %arg6: memref<1x32xf32, #tpu.memory_space<vmem>>, %arg7: memref<32x32xf32, #tpu.memory_space<vmem>>, %arg8: memref<1x32xf32, #tpu.memory_space<vmem>>, %arg9: memref<1x8x32xf32, #tpu.memory_space<vmem>>, %arg10: memref<1x4x8x8xf32, #tpu.memory_space<vmem>>) attributes {dimension_semantics = [#tpu.dimension_semantics<parallel>], iteration_bounds = array<i64: 2>, scalar_prefetch = 0 : i64, scratch_operands = 0 : i64, tpu.core_type = #tpu.core_type<tc>, window_params = [{transform_indices = @transform_0, window_bounds = array<i64: 1, 8, 32>}, {pipeline_mode = #tpu.pipeline_mode<synchronous>, transform_indices = @transform_1, window_bounds = array<i64: 32, 32>}, {pipeline_mode = #tpu.pipeline_mode<synchronous>, transform_indices = @transform_2, window_bounds = array<i64: 1, 32>}, {pipeline_mode = #tpu.pipeline_mode<synchronous>, transform_indices = @transform_3, window_bounds = array<i64: 32, 32>}, {pipeline_mode = #tpu.pipeline_mode<synchronous>, transform_indices = @transform_4, window_bounds = array<i64: 32, 32>}, {pipeline_mode = #tpu.pipeline_mode<synchronous>, transform_indices = @transform_5, window_bounds = array<i64: 1, 32>}, {pipeline_mode = #tpu.pipeline_mode<synchronous>, transform_indices = @transform_6, window_bounds = array<i64: 32, 32>}, {pipeline_mode = #tpu.pipeline_mode<synchronous>, transform_indices = @transform_7, window_bounds = array<i64: 1, 32>}, {transform_indices = @transform_8, window_bounds = array<i64: 1, 8, 32>}, {transform_indices = @transform_9, window_bounds = array<i64: 1, 4, 8, 8>}]} {
    %c0 = arith.constant 0 : index
    %c0_0 = arith.constant 0 : index
    %c0_1 = arith.constant 0 : index
    %0 = vector.load %arg1[%c0, %c0_0, %c0_1] : memref<1x8x32xf32, #tpu.memory_space<vmem>>, vector<1x8x32xf32>
    %1 = vector.shape_cast %0 : vector<1x8x32xf32> to vector<8x32xf32>
    %c0_2 = arith.constant 0 : index
    %c0_3 = arith.constant 0 : index
    %2 = vector.load %arg2[%c0_2, %c0_3] : memref<32x32xf32, #tpu.memory_space<vmem>>, vector<32x32xf32>
    %cst = arith.constant dense<0.000000e+00> : vector<8x32xf32>
    %3 = tpu.matmul %1, %2, %cst {dimension_numbers = #tpu.dot_dimension_numbers<[1], [1], [0], [0], [0, 0, 1, 0], [], []>} : vector<8x32xf32>, vector<32x32xf32>, vector<8x32xf32> -> vector<8x32xf32>
    %c0_4 = arith.constant 0 : index
    %c0_5 = arith.constant 0 : index
    %4 = vector.load %arg3[%c0_4, %c0_5] : memref<1x32xf32, #tpu.memory_space<vmem>>, vector<1x32xf32>
    %5 = vector.broadcast %4 : vector<1x32xf32> to vector<8x32xf32>
    %6 = arith.addf %3, %5 : vector<8x32xf32>
    %c0_6 = arith.constant 0 : index
    %c0_7 = arith.constant 0 : index
    %7 = vector.load %arg4[%c0_6, %c0_7] : memref<32x32xf32, #tpu.memory_space<vmem>>, vector<32x32xf32>
    %cst_8 = arith.constant dense<0.000000e+00> : vector<8x32xf32>
    %8 = tpu.matmul %1, %7, %cst_8 {dimension_numbers = #tpu.dot_dimension_numbers<[1], [1], [0], [0], [0, 0, 1, 0], [], []>} : vector<8x32xf32>, vector<32x32xf32>, vector<8x32xf32> -> vector<8x32xf32>
    %c0_9 = arith.constant 0 : index
    %c0_10 = arith.constant 0 : index
    %9 = vector.load %arg5[%c0_9, %c0_10] : memref<32x32xf32, #tpu.memory_space<vmem>>, vector<32x32xf32>
    %cst_11 = arith.constant dense<0.000000e+00> : vector<8x32xf32>
    %10 = tpu.matmul %1, %9, %cst_11 {dimension_numbers = #tpu.dot_dimension_numbers<[1], [1], [0], [0], [0, 0, 1, 0], [], []>} : vector<8x32xf32>, vector<32x32xf32>, vector<8x32xf32> -> vector<8x32xf32>
    %c0_12 = arith.constant 0 : index
    %c0_13 = arith.constant 0 : index
    %11 = vector.load %arg6[%c0_12, %c0_13] : memref<1x32xf32, #tpu.memory_space<vmem>>, vector<1x32xf32>
    %12 = vector.broadcast %11 : vector<1x32xf32> to vector<8x32xf32>
    %13 = arith.addf %10, %12 : vector<8x32xf32>
    %cst_14 = arith.constant 0.594603539 : f32
    %14 = vector.broadcast %cst_14 : f32 to vector<8x32xf32>
    %15 = arith.mulf %6, %14 : vector<8x32xf32>
    %cst_15 = arith.constant 0.594603539 : f32
    %16 = vector.broadcast %cst_15 : f32 to vector<8x32xf32>
    %17 = arith.mulf %8, %16 : vector<8x32xf32>
    %cst_16 = arith.constant 0.000000e+00 : f32
    %18 = vector.broadcast %cst_16 : f32 to vector<8x32xf32>
    %19 = vector.extract_strided_slice %15 {offsets = [0, 0], sizes = [8, 8], strides = [1, 1]} : vector<8x32xf32> to vector<8x8xf32>
    %20 = vector.extract_strided_slice %17 {offsets = [0, 0], sizes = [8, 8], strides = [1, 1]} : vector<8x32xf32> to vector<8x8xf32>
    %21 = vector.extract_strided_slice %13 {offsets = [0, 0], sizes = [8, 8], strides = [1, 1]} : vector<8x32xf32> to vector<8x8xf32>
    %cst_17 = arith.constant dense<0.000000e+00> : vector<8x8xf32>
    %22 = tpu.matmul %19, %20, %cst_17 {dimension_numbers = #tpu.dot_dimension_numbers<[1], [1], [0], [0], [0, 0, 1, 0], [], []>} : vector<8x8xf32>, vector<8x8xf32>, vector<8x8xf32> -> vector<8x8xf32>
    %c0_18 = arith.constant 0 : index
    %c0_19 = arith.constant 0 : index
    %c0_20 = arith.constant 0 : index
    %c0_21 = arith.constant 0 : index
    %23 = vector.load %arg10[%c0_18, %c0_19, %c0_20, %c0_21] : memref<1x4x8x8xf32, #tpu.memory_space<vmem>>, vector<1x1x8x8xf32>
    %24 = vector.shape_cast %23 : vector<1x1x8x8xf32> to vector<8x8xf32>
    %25 = vector.shape_cast %22 : vector<8x8xf32> to vector<1x1x8x8xf32>
    tpu.vector_store %arg10[%c0_18, %c0_19, %c0_20, %c0_21], %25 {strides = array<i32>} : memref<1x4x8x8xf32, #tpu.memory_space<vmem>>, vector<1x1x8x8xf32>,
    %cst_22 = arith.constant dense<0xFF800000> : vector<8xf32>
    %26 = vector.multi_reduction <maximumf>, %22, %cst_22 [1] : vector<8x8xf32> to vector<8xf32>
    %27 = vector.shape_cast %26 : vector<8xf32> to vector<8x1xf32>
    %28 = vector.broadcast %27 : vector<8x1xf32> to vector<8x8xf32>
    %29 = arith.subf %22, %28 : vector<8x8xf32>
    %30 = math.exp %29 : vector<8x8xf32>
    %cst_23 = arith.constant dense<0.000000e+00> : vector<8xf32>
    %31 = vector.multi_reduction <add>, %30, %cst_23 [1] : vector<8x8xf32> to vector<8xf32>
    %32 = vector.shape_cast %31 : vector<8xf32> to vector<8x1xf32>
    %33 = tpu.reciprocal %32 {approx = true} : vector<8x1xf32> -> vector<8x1xf32>
    %34 = arith.mulf %32, %33 : vector<8x1xf32>
    %cst_24 = arith.constant 2.000000e+00 : f32
    %35 = vector.broadcast %cst_24 : f32 to vector<8x1xf32>
    %36 = arith.subf %35, %34 : vector<8x1xf32>
    %37 = arith.mulf %33, %36 : vector<8x1xf32>
    %38 = vector.broadcast %37 : vector<8x1xf32> to vector<8x8xf32>
    %39 = arith.mulf %30, %38 : vector<8x8xf32>
    %cst_25 = arith.constant dense<0.000000e+00> : vector<8x8xf32>
    %40 = tpu.matmul %39, %21, %cst_25 {dimension_numbers = #tpu.dot_dimension_numbers<[1], [0], [0], [1], [0, 0, 1, 1], [], []>} : vector<8x8xf32>, vector<8x8xf32>, vector<8x8xf32> -> vector<8x8xf32>
    %c0_26 = arith.constant 0 : index
    %c0_27 = arith.constant 0 : index
    %41 = vector.load %arg7[%c0_26, %c0_27] : memref<32x32xf32, #tpu.memory_space<vmem>>, vector<32x8xf32>
    %cst_28 = arith.constant dense<0.000000e+00> : vector<8x32xf32>
    %42 = tpu.matmul %40, %41, %cst_28 {dimension_numbers = #tpu.dot_dimension_numbers<[1], [1], [0], [0], [0, 0, 1, 0], [], []>} : vector<8x8xf32>, vector<32x8xf32>, vector<8x32xf32> -> vector<8x32xf32>
    %43 = arith.addf %18, %42 : vector<8x32xf32>
    %44 = vector.extract_strided_slice %15 {offsets = [0, 8], sizes = [8, 8], strides = [1, 1]} : vector<8x32xf32> to vector<8x8xf32>
    %45 = vector.extract_strided_slice %17 {offsets = [0, 8], sizes = [8, 8], strides = [1, 1]} : vector<8x32xf32> to vector<8x8xf32>
    %46 = vector.extract_strided_slice %13 {offsets = [0, 8], sizes = [8, 8], strides = [1, 1]} : vector<8x32xf32> to vector<8x8xf32>
    %cst_29 = arith.constant dense<0.000000e+00> : vector<8x8xf32>
    %47 = tpu.matmul %44, %45, %cst_29 {dimension_numbers = #tpu.dot_dimension_numbers<[1], [1], [0], [0], [0, 0, 1, 0], [], []>} : vector<8x8xf32>, vector<8x8xf32>, vector<8x8xf32> -> vector<8x8xf32>
    %c0_30 = arith.constant 0 : index
    %c1 = arith.constant 1 : index
    %c0_31 = arith.constant 0 : index
    %c0_32 = arith.constant 0 : index
    %48 = vector.load %arg10[%c0_30, %c1, %c0_31, %c0_32] : memref<1x4x8x8xf32, #tpu.memory_space<vmem>>, vector<1x1x8x8xf32>
    %49 = vector.shape_cast %48 : vector<1x1x8x8xf32> to vector<8x8xf32>
    %50 = vector.shape_cast %47 : vector<8x8xf32> to vector<1x1x8x8xf32>
    tpu.vector_store %arg10[%c0_30, %c1, %c0_31, %c0_32], %50 {strides = array<i32>} : memref<1x4x8x8xf32, #tpu.memory_space<vmem>>, vector<1x1x8x8xf32>,
    %cst_33 = arith.constant dense<0xFF800000> : vector<8xf32>
    %51 = vector.multi_reduction <maximumf>, %47, %cst_33 [1] : vector<8x8xf32> to vector<8xf32>
    %52 = vector.shape_cast %51 : vector<8xf32> to vector<8x1xf32>
    %53 = vector.broadcast %52 : vector<8x1xf32> to vector<8x8xf32>
    %54 = arith.subf %47, %53 : vector<8x8xf32>
    %55 = math.exp %54 : vector<8x8xf32>
    %cst_34 = arith.constant dense<0.000000e+00> : vector<8xf32>
    %56 = vector.multi_reduction <add>, %55, %cst_34 [1] : vector<8x8xf32> to vector<8xf32>
    %57 = vector.shape_cast %56 : vector<8xf32> to vector<8x1xf32>
    %58 = tpu.reciprocal %57 {approx = true} : vector<8x1xf32> -> vector<8x1xf32>
    %59 = arith.mulf %57, %58 : vector<8x1xf32>
    %cst_35 = arith.constant 2.000000e+00 : f32
    %60 = vector.broadcast %cst_35 : f32 to vector<8x1xf32>
    %61 = arith.subf %60, %59 : vector<8x1xf32>
    %62 = arith.mulf %58, %61 : vector<8x1xf32>
    %63 = vector.broadcast %62 : vector<8x1xf32> to vector<8x8xf32>
    %64 = arith.mulf %55, %63 : vector<8x8xf32>
    %cst_36 = arith.constant dense<0.000000e+00> : vector<8x8xf32>
    %65 = tpu.matmul %64, %46, %cst_36 {dimension_numbers = #tpu.dot_dimension_numbers<[1], [0], [0], [1], [0, 0, 1, 1], [], []>} : vector<8x8xf32>, vector<8x8xf32>, vector<8x8xf32> -> vector<8x8xf32>
    %c0_37 = arith.constant 0 : index
    %c8 = arith.constant 8 : index
    %66 = vector.load %arg7[%c0_37, %c8] : memref<32x32xf32, #tpu.memory_space<vmem>>, vector<32x8xf32>
    %cst_38 = arith.constant dense<0.000000e+00> : vector<8x32xf32>
    %67 = tpu.matmul %65, %66, %cst_38 {dimension_numbers = #tpu.dot_dimension_numbers<[1], [1], [0], [0], [0, 0, 1, 0], [], []>} : vector<8x8xf32>, vector<32x8xf32>, vector<8x32xf32> -> vector<8x32xf32>
    %68 = arith.addf %43, %67 : vector<8x32xf32>
    %69 = vector.extract_strided_slice %15 {offsets = [0, 16], sizes = [8, 8], strides = [1, 1]} : vector<8x32xf32> to vector<8x8xf32>
    %70 = vector.extract_strided_slice %17 {offsets = [0, 16], sizes = [8, 8], strides = [1, 1]} : vector<8x32xf32> to vector<8x8xf32>
    %71 = vector.extract_strided_slice %13 {offsets = [0, 16], sizes = [8, 8], strides = [1, 1]} : vector<8x32xf32> to vector<8x8xf32>
    %cst_39 = arith.constant dense<0.000000e+00> : vector<8x8xf32>
    %72 = tpu.matmul %69, %70, %cst_39 {dimension_numbers = #tpu.dot_dimension_numbers<[1], [1], [0], [0], [0, 0, 1, 0], [], []>} : vector<8x8xf32>, vector<8x8xf32>, vector<8x8xf32> -> vector<8x8xf32>
    %c0_40 = arith.constant 0 : index
    %c2 = arith.constant 2 : index
    %c0_41 = arith.constant 0 : index
    %c0_42 = arith.constant 0 : index
    %73 = vector.load %arg10[%c0_40, %c2, %c0_41, %c0_42] : memref<1x4x8x8xf32, #tpu.memory_space<vmem>>, vector<1x1x8x8xf32>
    %74 = vector.shape_cast %73 : vector<1x1x8x8xf32> to vector<8x8xf32>
    %75 = vector.shape_cast %72 : vector<8x8xf32> to vector<1x1x8x8xf32>
    tpu.vector_store %arg10[%c0_40, %c2, %c0_41, %c0_42], %75 {strides = array<i32>} : memref<1x4x8x8xf32, #tpu.memory_space<vmem>>, vector<1x1x8x8xf32>,
    %cst_43 = arith.constant dense<0xFF800000> : vector<8xf32>
    %76 = vector.multi_reduction <maximumf>, %72, %cst_43 [1] : vector<8x8xf32> to vector<8xf32>
    %77 = vector.shape_cast %76 : vector<8xf32> to vector<8x1xf32>
    %78 = vector.broadcast %77 : vector<8x1xf32> to vector<8x8xf32>
    %79 = arith.subf %72, %78 : vector<8x8xf32>
    %80 = math.exp %79 : vector<8x8xf32>
    %cst_44 = arith.constant dense<0.000000e+00> : vector<8xf32>
    %81 = vector.multi_reduction <add>, %80, %cst_44 [1] : vector<8x8xf32> to vector<8xf32>
    %82 = vector.shape_cast %81 : vector<8xf32> to vector<8x1xf32>
    %83 = tpu.reciprocal %82 {approx = true} : vector<8x1xf32> -> vector<8x1xf32>
    %84 = arith.mulf %82, %83 : vector<8x1xf32>
    %cst_45 = arith.constant 2.000000e+00 : f32
    %85 = vector.broadcast %cst_45 : f32 to vector<8x1xf32>
    %86 = arith.subf %85, %84 : vector<8x1xf32>
    %87 = arith.mulf %83, %86 : vector<8x1xf32>
    %88 = vector.broadcast %87 : vector<8x1xf32> to vector<8x8xf32>
    %89 = arith.mulf %80, %88 : vector<8x8xf32>
    %cst_46 = arith.constant dense<0.000000e+00> : vector<8x8xf32>
    %90 = tpu.matmul %89, %71, %cst_46 {dimension_numbers = #tpu.dot_dimension_numbers<[1], [0], [0], [1], [0, 0, 1, 1], [], []>} : vector<8x8xf32>, vector<8x8xf32>, vector<8x8xf32> -> vector<8x8xf32>
    %c0_47 = arith.constant 0 : index
    %c16 = arith.constant 16 : index
    %91 = vector.load %arg7[%c0_47, %c16] : memref<32x32xf32, #tpu.memory_space<vmem>>, vector<32x8xf32>
    %cst_48 = arith.constant dense<0.000000e+00> : vector<8x32xf32>
    %92 = tpu.matmul %90, %91, %cst_48 {dimension_numbers = #tpu.dot_dimension_numbers<[1], [1], [0], [0], [0, 0, 1, 0], [], []>} : vector<8x8xf32>, vector<32x8xf32>, vector<8x32xf32> -> vector<8x32xf32>
    %93 = arith.addf %68, %92 : vector<8x32xf32>
    %94 = vector.extract_strided_slice %15 {offsets = [0, 24], sizes = [8, 8], strides = [1, 1]} : vector<8x32xf32> to vector<8x8xf32>
    %95 = vector.extract_strided_slice %17 {offsets = [0, 24], sizes = [8, 8], strides = [1, 1]} : vector<8x32xf32> to vector<8x8xf32>
    %96 = vector.extract_strided_slice %13 {offsets = [0, 24], sizes = [8, 8], strides = [1, 1]} : vector<8x32xf32> to vector<8x8xf32>
    %cst_49 = arith.constant dense<0.000000e+00> : vector<8x8xf32>
    %97 = tpu.matmul %94, %95, %cst_49 {dimension_numbers = #tpu.dot_dimension_numbers<[1], [1], [0], [0], [0, 0, 1, 0], [], []>} : vector<8x8xf32>, vector<8x8xf32>, vector<8x8xf32> -> vector<8x8xf32>
    %c0_50 = arith.constant 0 : index
    %c3 = arith.constant 3 : index
    %c0_51 = arith.constant 0 : index
    %c0_52 = arith.constant 0 : index
    %98 = vector.load %arg10[%c0_50, %c3, %c0_51, %c0_52] : memref<1x4x8x8xf32, #tpu.memory_space<vmem>>, vector<1x1x8x8xf32>
    %99 = vector.shape_cast %98 : vector<1x1x8x8xf32> to vector<8x8xf32>
    %100 = vector.shape_cast %97 : vector<8x8xf32> to vector<1x1x8x8xf32>
    tpu.vector_store %arg10[%c0_50, %c3, %c0_51, %c0_52], %100 {strides = array<i32>} : memref<1x4x8x8xf32, #tpu.memory_space<vmem>>, vector<1x1x8x8xf32>,
    %cst_53 = arith.constant dense<0xFF800000> : vector<8xf32>
    %101 = vector.multi_reduction <maximumf>, %97, %cst_53 [1] : vector<8x8xf32> to vector<8xf32>
    %102 = vector.shape_cast %101 : vector<8xf32> to vector<8x1xf32>
    %103 = vector.broadcast %102 : vector<8x1xf32> to vector<8x8xf32>
    %104 = arith.subf %97, %103 : vector<8x8xf32>
    %105 = math.exp %104 : vector<8x8xf32>
    %cst_54 = arith.constant dense<0.000000e+00> : vector<8xf32>
    %106 = vector.multi_reduction <add>, %105, %cst_54 [1] : vector<8x8xf32> to vector<8xf32>
    %107 = vector.shape_cast %106 : vector<8xf32> to vector<8x1xf32>
    %108 = tpu.reciprocal %107 {approx = true} : vector<8x1xf32> -> vector<8x1xf32>
    %109 = arith.mulf %107, %108 : vector<8x1xf32>
    %cst_55 = arith.constant 2.000000e+00 : f32
    %110 = vector.broadcast %cst_55 : f32 to vector<8x1xf32>
    %111 = arith.subf %110, %109 : vector<8x1xf32>
    %112 = arith.mulf %108, %111 : vector<8x1xf32>
    %113 = vector.broadcast %112 : vector<8x1xf32> to vector<8x8xf32>
    %114 = arith.mulf %105, %113 : vector<8x8xf32>
    %cst_56 = arith.constant dense<0.000000e+00> : vector<8x8xf32>
    %115 = tpu.matmul %114, %96, %cst_56 {dimension_numbers = #tpu.dot_dimension_numbers<[1], [0], [0], [1], [0, 0, 1, 1], [], []>} : vector<8x8xf32>, vector<8x8xf32>, vector<8x8xf32> -> vector<8x8xf32>
    %c0_57 = arith.constant 0 : index
    %c24 = arith.constant 24 : index
    %116 = vector.load %arg7[%c0_57, %c24] : memref<32x32xf32, #tpu.memory_space<vmem>>, vector<32x8xf32>
    %cst_58 = arith.constant dense<0.000000e+00> : vector<8x32xf32>
    %117 = tpu.matmul %115, %116, %cst_58 {dimension_numbers = #tpu.dot_dimension_numbers<[1], [1], [0], [0], [0, 0, 1, 0], [], []>} : vector<8x8xf32>, vector<32x8xf32>, vector<8x32xf32> -> vector<8x32xf32>
    %118 = arith.addf %93, %117 : vector<8x32xf32>
    %c0_59 = arith.constant 0 : index
    %c0_60 = arith.constant 0 : index
    %119 = vector.load %arg8[%c0_59, %c0_60] : memref<1x32xf32, #tpu.memory_space<vmem>>, vector<1x32xf32>
    %120 = vector.broadcast %119 : vector<1x32xf32> to vector<8x32xf32>
    %121 = arith.addf %118, %120 : vector<8x32xf32>
    %c0_61 = arith.constant 0 : index
    %c0_62 = arith.constant 0 : index
    %c0_63 = arith.constant 0 : index
    %122 = vector.load %arg9[%c0_61, %c0_62, %c0_63] : memref<1x8x32xf32, #tpu.memory_space<vmem>>, vector<1x8x32xf32>
    %123 = vector.shape_cast %122 : vector<1x8x32xf32> to vector<8x32xf32>
    %124 = vector.shape_cast %121 : vector<8x32xf32> to vector<1x8x32xf32>
    tpu.vector_store %arg9[%c0_61, %c0_62, %c0_63], %124 {strides = array<i32>} : memref<1x8x32xf32, #tpu.memory_space<vmem>>, vector<1x8x32xf32>,
    return
  }
  func.func @transform_0(%arg0: i32) -> (i32, i32, i32) {
    %c0_i32 = arith.constant 0 : i32
    %c0_i32_0 = arith.constant 0 : i32
    %c0_i32_1 = arith.constant 0 : i32
    return %arg0, %c0_i32, %c0_i32_0 : i32, i32, i32
  }
  func.func @transform_1(%arg0: i32) -> (i32, i32) {
    %c0_i32 = arith.constant 0 : i32
    %c0_i32_0 = arith.constant 0 : i32
    %c0_i32_1 = arith.constant 0 : i32
    return %c0_i32, %c0_i32_0 : i32, i32
  }
  func.func @transform_2(%arg0: i32) -> (i32, i32) {
    %c0_i32 = arith.constant 0 : i32
    %c0_i32_0 = arith.constant 0 : i32
    %c0_i32_1 = arith.constant 0 : i32
    return %c0_i32, %c0_i32_0 : i32, i32
  }
  func.func @transform_3(%arg0: i32) -> (i32, i32) {
    %c0_i32 = arith.constant 0 : i32
    %c0_i32_0 = arith.constant 0 : i32
    %c0_i32_1 = arith.constant 0 : i32
    return %c0_i32, %c0_i32_0 : i32, i32
  }
  func.func @transform_4(%arg0: i32) -> (i32, i32) {
    %c0_i32 = arith.constant 0 : i32
    %c0_i32_0 = arith.constant 0 : i32
    %c0_i32_1 = arith.constant 0 : i32
    return %c0_i32, %c0_i32_0 : i32, i32
  }
  func.func @transform_5(%arg0: i32) -> (i32, i32) {
    %c0_i32 = arith.constant 0 : i32
    %c0_i32_0 = arith.constant 0 : i32
    %c0_i32_1 = arith.constant 0 : i32
    return %c0_i32, %c0_i32_0 : i32, i32
  }
  func.func @transform_6(%arg0: i32) -> (i32, i32) {
    %c0_i32 = arith.constant 0 : i32
    %c0_i32_0 = arith.constant 0 : i32
    %c0_i32_1 = arith.constant 0 : i32
    return %c0_i32, %c0_i32_0 : i32, i32
  }
  func.func @transform_7(%arg0: i32) -> (i32, i32) {
    %c0_i32 = arith.constant 0 : i32
    %c0_i32_0 = arith.constant 0 : i32
    %c0_i32_1 = arith.constant 0 : i32
    return %c0_i32, %c0_i32_0 : i32, i32
  }
  func.func @transform_8(%arg0: i32) -> (i32, i32, i32) {
    %c0_i32 = arith.constant 0 : i32
    %c0_i32_0 = arith.constant 0 : i32
    %c0_i32_1 = arith.constant 0 : i32
    return %arg0, %c0_i32, %c0_i32_0 : i32, i32, i32
  }
  func.func @transform_9(%arg0: i32) -> (i32, i32, i32, i32) {
    %c0_i32 = arith.constant 0 : i32
    %c0_i32_0 = arith.constant 0 : i32
    %c0_i32_1 = arith.constant 0 : i32
    %c0_i32_2 = arith.constant 0 : i32
    return %arg0, %c0_i32, %c0_i32_0, %c0_i32_1 : i32, i32, i32, i32
  }
}

</mosaic_0001>

<bundles_post_ra>
// kernel: tpu_custom_call.1
= control target key start
LH: loop header
LB: loop body
LE: loop exit
PB: predicated region body
PF: predicated region fallthrough
CT: control target
= control target key end

     0   :  { %s3068_s0 = inlined_call_operand.hbm [shape: f32[2,8,32], index: 0, kind: input, shape index: {}]   ;;  %s3069_s1 = inlined_call_operand.hbm [shape: f32[32,32], index: 1, kind: input, shape index: {}]   ;;  %s3070_s2 = inlined_call_operand.vmem [shape: f32[1,32], index: 2, kind: input, shape index: {}]   ;;  %s3071_s3 = inlined_call_operand.hbm [shape: f32[32,32], index: 3, kind: input, shape index: {}]   ;;  %s3072_s4 = inlined_call_operand.hbm [shape: f32[32,32], index: 4, kind: input, shape index: {}]   ;;  %s3073_s5 = inlined_call_operand.vmem [shape: f32[1,32], index: 5, kind: input, shape index: {}]   ;;  %s3074_s6 = inlined_call_operand.hbm [shape: f32[32,32], index: 6, kind: input, shape index: {}]   ;;  %s3075_s7 = inlined_call_operand.vmem [shape: f32[1,32], index: 7, kind: input, shape index: {}]   ;;  %s3076_s8 = inlined_call_operand.hbm [shape: f32[2,8,32], index: 8, kind: output, shape index: {0}]   ;;  %s3077_s9 = inlined_call_operand.hbm [shape: f32[2,4,8,8], index: 9, kind: output, shape index: {1}]  }
   0x1   :  { %3082 = sst [smem:[#allocation19_spill]] %s3069_s1 }
   0x2   :  { %3083 = sst [smem:[#allocation20_spill]] %s3071_s3 }
   0x3   :  { %3084 = sst [smem:[#allocation21_spill]] %s3072_s4 }
   0x4   :  { %3085 = sst [smem:[#allocation22_spill]] %s3074_s6 }
   0x5   :  { %15 = vsyncpa [#allocation3], 0 }
   0x6   :  { %17 = vsyncpa [#allocation3 + $0x1], 0 }
   0x7   :  { %18 = vsyncpa [#allocation6], 0 }
   0x8   :  { %19 = vsyncpa [#allocation9], 0 }
   0x9   :  { %20 = vsyncpa [#allocation4], 0 }
   0xa   :  { %22 = vsyncpa [#allocation4 + $0x1], 0 }
   0xb   :  { %23 = vsyncpa [#allocation13], 0 }
   0xc   :  { %25 = vsyncpa [#allocation13 + $0x1], 0  ;;  %s2603_s30 = smov 0   ;;  %s2605_s10 = smov 0  }
   0xd   :  { %s2607_s11 = smov 0   ;;  %s2609_s12 = smov 0  }
   0xe LB: > { %s2537_s13 = smov [#allocation5]   ;;  %s2624_s15 = sadd.s32 4294967295, %s2535_s12   ;;  %s2535_s12 = sphi %s2609_s12, %s3109_s12   ;;  %s2531_s11 = sphi %s2607_s11, %s3108_s11   ;;  %s2527_s10 = sphi %s2605_s10, %s3107_s10   ;;  %s2523_s30 = sphi %s2603_s30, %s3106_s30  }
   0xf   : > { %s273_s14 = sshll.u32 %s2537_s13, 4  ;;  %p1939_p0 = scmp.ge.s32.totalorder %s2535_s12, 1  ;;  %s274_s14 = int_to_ptr.vmem [resolvable:$true] %s273_s14 }
  0x10   : > { %p3078_p1 = scmp.eq.s32.totalorder %s2624_s15, 0  ;;  %p261_p2 = scmp.lt.s32.totalorder %s2535_s12, 3 }
  0x11   : > { %s2538_s17 = smov [#allocation8]   ;;  %s2539_s20 = smov [#allocation7]  }
  0x12   : > { %p2629_p3 = pnand %p1939_p0, %p261_p2  ;;  %s302_s18 = sshll.u32 %s2538_s17, 4  ;;  %s2642_s18 = int_to_ptr.vmem [resolvable:$true] %s302_s18 }
  0x13   : > { %s289_s21 = sshll.u32 %s2539_s20, 4  ;;  %s2312_s22 = scalar_lea.vmem %s274_s14, 512  ;;  %s2644_s21 = int_to_ptr.vmem [resolvable:$true] %s289_s21 }
  0x14   : > { %s3086_s16 = scalar_select %p2629_p3, 1, 0 }
  0x15   : > { %p2206_p5 = pneg %p2629_p3  ;;  %p2313_p8 = scmp.ne.s32.totalorder %s274_s14, %s2312_s22 }
  0x16   : > { %p2320_p11 = scmp.lt.s32.totalorder %s274_s14, %s274_s14  ;;  %p2321_p12 = scmp.lt.s32.totalorder %s2312_s22, %s2312_s22 }
  0x17   : > { %p2638_p6 = pnand %p2206_p5, %p3078_p1 }
  0x18   : > { %p2322_p13 = por %p2321_p12, %p2320_p11 }
  0x19   : > { %p2303_p7 = pneg %p2638_p6 }
  0x1b   : > { %p2315_p9 = pnand %p2313_p8, %p2303_p7 }
  0x1d   : > { %p2316_p10 = pneg %p2315_p9 }
  0x1f   : > { %p2323_p0 = pnand %p2322_p13, %p2316_p10 }
  0x21   : > { %2326 = shalt.err (!%p2323_p0)
}
  0x22   : > { %s2540_s23 = smov 128   ;;  %s2541_s24 = smov 8  }
  0x23   : > { %s3088_s1 = sld [smem:[#allocation19_spill]]  ;;  %s2338_s27 = scalar_lea.vmem %s2642_s18, 512 }
  0x24   : > { %p2339_p2 = scmp.ne.s32.totalorder %s2642_s18, %s2338_s27  ;;  %p2346_p9 = scmp.lt.s32.totalorder %s2642_s18, %s2642_s18 }
  0x25   : > { %p2347_p10 = scmp.lt.s32.totalorder %s2338_s27, %s2338_s27 }
  0x26   : > { %p2341_p5 = pnand %p2339_p2, %p2303_p7 }
  0x27   : > { %p2348_p11 = por %p2347_p10, %p2346_p9 }
  0x28   : > { %p2342_p8 = pneg %p2341_p5 }
  0x29   : > { %2209 = dma.hbm_to_vmem [thread:$0]  (!%p2638_p6), %s3088_s1, 512, %s274_s14, [#allocation6], %s2540_s23, %s2540_s23, %s2541_s24  }
  0x2a   : > { %p2349_p12 = pnand %p2348_p11, %p2342_p8 }
  0x2c   : > { %2352 = shalt.err (!%p2349_p12)
}
  0x2d   : > { %s3089_s4 = sld [smem:[#allocation21_spill]]  ;;  %s2364_s13 = scalar_lea.vmem %s2644_s21, 512 }
  0x2e   : > { %p2365_p13 = scmp.ne.s32.totalorder %s2644_s21, %s2364_s13  ;;  %p2372_p5 = scmp.lt.s32.totalorder %s2644_s21, %s2644_s21 }
  0x2f   : > { %p2373_p8 = scmp.lt.s32.totalorder %s2364_s13, %s2364_s13 }
  0x30   : > { %p2367_p0 = pnand %p2365_p13, %p2303_p7 }
  0x31   : > { %p2374_p9 = por %p2373_p8, %p2372_p5 }
  0x32   : > { %p2368_p2 = pneg %p2367_p0 }
  0x33   : > { %2215 = dma.hbm_to_vmem [thread:$0]  (!%p2638_p6), %s3089_s4, 512, %s2642_s18, [#allocation9], %s2540_s23, %s2540_s23, %s2541_s24  }
  0x34   : > { %p2375_p10 = pnand %p2374_p9, %p2368_p2 }
  0x36   : > { %2378 = shalt.err (!%p2375_p10)
}
  0x37   : > { %s3090_s3 = sld [smem:[#allocation20_spill]]  ;;  %s2542_s18 = smov [#allocation10]  }
  0x38   : > { %s318_s20 = sshll.u32 %s2542_s18, 4  ;;  %s319_s20 = int_to_ptr.vmem [resolvable:$true] %s318_s20 }
  0x39   : > { %s2390_s22 = scalar_lea.vmem %s319_s20, 512  ;;  %p2398_p0 = scmp.lt.s32.totalorder %s319_s20, %s319_s20 }
  0x3a   : > { %p2391_p11 = scmp.ne.s32.totalorder %s319_s20, %s2390_s22  ;;  %p2399_p2 = scmp.lt.s32.totalorder %s2390_s22, %s2390_s22 }
  0x3c   : > { %p2393_p12 = pnand %p2391_p11, %p2303_p7  ;;  %p2400_p5 = por %p2399_p2, %p2398_p0 }
  0x3d   : > { %2212 = dma.hbm_to_vmem [thread:$0]  (!%p2638_p6), %s3090_s3, 512, %s2644_s21, [#allocation6], %s2540_s23, %s2540_s23, %s2541_s24  }
  0x3e   : > { %p2394_p13 = pneg %p2393_p12 }
  0x40   : > { %p2401_p8 = pnand %p2400_p5, %p2394_p13 }
  0x42   : > { %2404 = shalt.err (!%p2401_p8)
}
  0x43   : > { %s3091_s6 = sld [smem:[#allocation22_spill]]  ;;  %s1938_s19 = sadd.s32 4294967294, %s2535_s12  }
  0x44   : > { %s2704_s26 = sadd.s32 1, %s2535_s12   ;;  %s38_s28 = sadd.s32 1, %s2531_s11 }
  0x45   : > { %s35_s27 = ssub.s32 %s2535_s12, %s2704_s26  ;;  %p45_p9 = scmp.ne.s32.totalorder %s2531_s11, %s2527_s10 }
  0x46   : > { %p36_p7 = scmp.eq.s32.totalorder %s35_s27, 0  ;;  %p46_p10 = scmp.eq.s32.totalorder %s2535_s12, 0 }
  0x47   : > { %p51_p11 = scmp.ne.s32.totalorder %s2527_s10, %s2523_s30  ;;  %p222_p13 = scmp.eq.s32.totalorder %s2624_s15, 1 }
  0x48   : > { %s2715_s29 = scalar_select %p36_p7, %s2531_s11, %s38_s28  }
  0x49   : > { %2218 = dma.hbm_to_vmem [thread:$0]  (!%p2638_p6), %s3091_s6, 512, %s319_s20, [#allocation9], %s2540_s23, %s2540_s23, %s2541_s24  }
  0x4a   : > { %p2717_p12 = por %p46_p10, %p45_p9  ;;  %p2723_p6 = por %p3078_p1, %p51_p11 }
  0x4b   : > { %p228_p0 = scmp.eq.s32.totalorder %s1938_s19, 1  ;;  %p2234_p2 = scmp.lt.s32.totalorder %s2535_s12, 2 }
  0x4c   : > { %s3093_s23 = scalar_select %p2723_p6, 1, 0 }
  0x4d   : > { %s335_s24 = sand.u32 1, %s2531_s11   ;;  %p2730_p5 = por %p222_p13, %p45_p9 }
  0x4e   : > { %p2734_p8 = por %p228_p0, %p51_p11  ;;  %s1945_s18 = sshll.u32 %s335_s24, 3 }
  0x4f   : > { %s3094_s14 = scalar_select %p2730_p5, 1, 0 }
  0x50   : > { %s3095_s17 = scalar_select %p2734_p8, 1, 0 }
  0x51   : > { %s1946_s20 = sshll.u32 %s2535_s12, 7  ;;  %s339_s19 = scalar_lea.vmem [#allocation2], %s1945_s18 }
  0x52   : > { %s2742_s25 = scalar_lea.hbm %s3068_s0, %s1946_s20  ;;  %s346_s27 = sshll.u32 %s339_s19, 4  ;;  %s347_s27 = int_to_ptr.vmem [resolvable:$true] %s346_s27 }
  0x53   : > { %p2746_p7 = pnand %p2234_p2, %p2717_p12  ;;  %s336_s1 = scalar_lea.sflag [#allocation3], %s335_s24 }
  0x54   : > { %s2405_s3 = scalar_lea.hbm %s2742_s25, 128  ;;  %s2410_s21 = scalar_lea.hbm %s3068_s0, 256 }
  0x55   : > { %p2406_p9 = scmp.ne.s32.totalorder %s2742_s25, %s2405_s3  ;;  %p2407_p10 = pneg %p2746_p7 }
  0x56   : > { %p2411_p0 = scmp.lt.s32.totalorder %s2742_s25, %s3068_s0  ;;  %p2412_p12 = scmp.lt.s32.totalorder %s2410_s21, %s2405_s3 }
  0x57   : > { %p2408_p11 = pnand %p2407_p10, %p2406_p9 }
  0x58   : > { %p2413_p2 = por %p2412_p12, %p2411_p0 }
  0x59   : > { %p2409_p13 = pneg %p2408_p11 }
  0x5b   : > { %p2414_p4 = pnand %p2413_p2, %p2409_p13 }
  0x5d   : > { %2417 = shalt.err (!%p2414_p4)
}
  0x5e   : > { %s2418_s13 = scalar_lea.vmem %s347_s27, 128  ;;  %s2543_s24 = smov [#allocation2]  }
  0x5f   : > { %p2419_p1 = scmp.ne.s32.totalorder %s347_s27, %s2418_s13  ;;  %s2423_s4 = sshll.u32 %s2543_s24, 4  ;;  %s2424_s4 = int_to_ptr.vmem [resolvable:$false] %s2423_s4 }
  0x60   : > { %s2425_s6 = scalar_lea.vmem %s2424_s4, 256  ;;  %p2426_p9 = scmp.lt.s32.totalorder %s347_s27, %s2424_s4 }
  0x61   : > { %p2421_p8 = pnand %p2419_p1, %p2407_p10  ;;  %p2427_p11 = scmp.lt.s32.totalorder %s2425_s6, %s2418_s13 }
  0x63   : > { %p2422_p5 = pneg %p2421_p8  ;;  %p2428_p6 = por %p2427_p11, %p2426_p9 }
  0x65   : > { %p2429_p3 = pnand %p2428_p6, %p2422_p5 }
  0x67   : > { %2432 = shalt.err (!%p2429_p3)
}
  0x68   : > { %2222 = dma.hbm_to_vmem [thread:$0]  (!%p2746_p7), %s2742_s25, 128, %s347_s27, %s336_s1  }
  0x69   : > { %p3097_p13 = scmp.ne.s32.totalorder %s3086_s16, 0 }
  0x6a   : > { %s2767_s3 = sand.u32 (!%p3097_p13), 1, %s2527_s10   ;;  %p3098_p1 = scmp.ne.s32.totalorder (!%p3097_p13), %s3093_s23, 0 }
  0x6b   : > { %355 = sbr.rel (%p3097_p13) target bundleno = 2987 (0xbab), region = 52  ;;  %s1948_s20 = sshll.u32 (!%p3097_p13), %s2767_s3, 3 }
  0x6c   : > { %s358_s4 = scalar_lea.sflag (!%p3097_p13), [#allocation3], %s2767_s3  ;;  %s2773_s6 = scalar_lea.vmem (!%p3097_p13), [#allocation2], %s1948_s20 }
  0x70   : > { %2502 = dma.done.wait (%p3098_p1), %s358_s4, 128  }
  0x71   : > { %2504 = vsyncadd (%p3098_p1), %s358_s4, 4294967168  ;;  %p3099_p3 = scmp.eq.s32.totalorder %s2624_s15, 0 }
  0x73   : > { %2506 = dma.done.wait (%p3099_p3), [#allocation6], 1024   ;;  %p3100_p4 = pmov %p3099_p3 }
  0x74   : > { %p3101_p6 = pmov %p3099_p3 }
  0x75   : > { %2508 = vsyncadd (%p3100_p4), [#allocation6], 4294966272 }
  0x76   : > { %2510 = dma.done.wait (%p3101_p6), [#allocation9], 1024   ;;  %p3102_p5 = pmov %p3099_p3 }
  0x77   : > { %v2544_v0 = vmov 0.0   ;;  %vm2545_vm0 = vmmov 0   ;;  %vm429_vm1 = vcmask 261120   ;;  %v421_v1 = vld [vmem:[#allocation5 + $0x18] sm:$0xff]  ;;  %v420_v3 = vld [vmem:[#allocation5 + $0x10] sm:$0xff]  ;;  %v419_v5 = vld [vmem:[#allocation5 + $0x8] sm:$0xff] }
  0x78   : > { %2512 = vsyncadd (%p3102_p5), [#allocation9], 4294966272  ;;  %2067 = vmatprep.subr.mxu0 %v2544_v0  ;;  %2078 = vmatprep.subr.mxu1 %v2544_v0  ;;  %v518_v2 = vld [vmem:[#allocation7 + $0x18] sm:$0xff]  ;;  %v517_v4 = vld [vmem:[#allocation7 + $0x10] sm:$0xff]  ;;  %vm696_vm2 = vcmask 64512   ;;  %s2546_s23 = smov 120  }
  0x79   : > { %2075 = vmatprep.mubr.msk.f32.mxu0 %vm2545_vm0, %v2544_v0  ;;  %2086 = vmatprep.mubr.msk.f32.mxu1 %vm2545_vm0, %v2544_v0  ;;  %v516_v6 = vld [vmem:[#allocation7 + $0x8] sm:$0xff]  ;;  %v418_v7 = vld [vmem:[#allocation5] sm:$0xff]  ;;  %v417_v9 = vld [vmem:[%s2773_s6] sm:$0xff]  ;;  %s1954_s28 = sshll.u32 %s2767_s3, 5  ;;  %s2547_s21 = smov 112  }
  0x7a   : > { %2068 = vmatpush3.xpose.msk.msra.mxu0 %vm429_vm1, %v421_v1  ;;  %2079 = vmatpush3.xpose.msk.msra.mxu1 %vm429_vm1, %v518_v2  ;;  %v515_v8 = vld [vmem:[#allocation7] sm:$0xff]  ;;  %v604_v10 = vld [vmem:[#allocation8 + $0x18] sm:$0xff]  ;;  %v603_v11 = vld [vmem:[#allocation8 + $0x10] sm:$0xff]  ;;  %s2853_s22 = scalar_lea.vmem [#allocation12], %s1954_s28  ;;  %s2548_s18 = smov 104  }
  0x7b   : > { %2069 = vmatprep.subr.mxu0 %v2544_v0  ;;  %2080 = vmatprep.subr.mxu1 %v2544_v0  ;;  %v602_v12 = vld [vmem:[#allocation8 + $0x8] sm:$0xff]  ;;  %v601_v13 = vld [vmem:[#allocation8] sm:$0xff]  ;;  %v1955_v14 = vld [vmem:[%s3070_s2] ss:$0 sm:$0xff]  ;;  %s1795_s19 = sshll.u32 %s2853_s22, 4  ;;  %s2015_s13 = sshll.u32 %s2624_s15, 9  ;;  %s2996_s19 = int_to_ptr.vmem [resolvable:$true] %s1795_s19 }
  0x7c   : > { %v1966_v22 = vld [vmem:[%s3073_s5] ss:$0 sm:$0xff]  ;;  %v2872_v47 = vld [vmem:[#allocation10 + $0x18] sm:$0xff]  ;;  %v2880_v49 = vld [vmem:[#allocation10 + $0x8] sm:$0xff]  ;;  %s3002_s6 = scalar_lea.hbm %s3077_s9, %s2015_s13  ;;  %s1769_s1 = scalar_lea.sflag [#allocation13], %s2767_s3 }
  0x7d   : > { %v2876_v48 = vld [vmem:[#allocation10 + $0x10] sm:$0xff]  ;;  %v2896_v59 = vld [vmem:[#allocation10] sm:$0xff]  ;;  %s2433_s16 = scalar_lea.vmem %s2996_s19, 512  ;;  %p3103_p7 = scmp.ne.s32.totalorder %s3094_s14, 0 }
  0x7e   : > { %2070 = vmatpush3.xpose.msk.msra.mxu0 %vm429_vm1, %v420_v3  ;;  %2081 = vmatpush3.xpose.msk.msra.mxu1 %vm429_vm1, %v517_v4  ;;  %p2434_p8 = scmp.ne.s32.totalorder %s2996_s19, %s2433_s16 }
  0x7f   : > { %2071 = vmatprep.subr.mxu0 %v2544_v0  ;;  %2082 = vmatprep.subr.mxu1 %v2544_v0 }
  0x80   : > { %p2435_p10 = pnand %p2434_p8, %p3103_p7 }
  0x82   : > { %2072 = vmatpush3.xpose.msk.msra.mxu0 %vm429_vm1, %v419_v5  ;;  %2083 = vmatpush3.xpose.msk.msra.mxu1 %vm429_vm1, %v516_v6  ;;  %p2436_p0 = pneg %p2435_p10 }
  0x83   : > { %2073 = vmatprep.subr.mxu0 %v2544_v0  ;;  %2084 = vmatprep.subr.mxu1 %v2544_v0 }
  0x86   : > { %2074 = vmatpush3.xpose.msk.msra.mxu0 %vm429_vm1, %v418_v7  ;;  %2085 = vmatpush3.xpose.msk.msra.mxu1 %vm429_vm1, %v515_v8 }
  0x87   : > { %2089 = vmatprep.subr.mxu0 %v2544_v0  ;;  %2105 = vmatprep.subr.mxu1 %v2544_v0 }
  0x89   : > { %2076 = vmatmul.mubr.msk.f32.vlgmr.msra.gmra.mxu0 %vm429_vm1, %v417_v9  ;;  %2087 = vmatmul.mubr.msk.f32.vlgmr.msra.gmra.mxu1 %vm429_vm1, %v417_v9 }
  0x8a   : > { %2090 = vmatpush3.xpose.msk.msra.mxu0 %vm429_vm1, %v604_v10  ;;  %2097 = vmatprep.mubr.msk.f32.mxu0 %vm2545_vm0, %v2544_v0 }
  0x8b   : > { %2091 = vmatprep.subr.mxu0 %v2544_v0  ;;  %2107 = vmatprep.mubr.msk.f32.mxu1 %vm2545_vm0, %v2544_v0 }
  0x8e   : > { %2092 = vmatpush3.xpose.msk.msra.mxu0 %vm429_vm1, %v603_v11 }
  0x8f   : > { %2093 = vmatprep.subr.mxu0 %v2544_v0 }
  0x92   : > { %2094 = vmatpush3.xpose.msk.msra.mxu0 %vm429_vm1, %v602_v12 }
  0x93   : > { %2095 = vmatprep.subr.mxu0 %v2544_v0 }
  0x96   : > { %2096 = vmatpush3.xpose.msk.msra.mxu0 %vm429_vm1, %v601_v13 }
  0x97   : > { %2100 = vmatprep.subr.mxu0 %v2544_v0 }
  0x99   : > { %2098 = vmatmul.mubr.msk.f32.vlgmr.msra.gmra.mxu0 %vm429_vm1, %v417_v9 }
  0x9a   : > { %2102 = vmatprep.mubr.msk.f32.mxu0 %vm2545_vm0, %v2544_v0 }
 0x149   : > { %v511_v15 = vpop.f32.mrf.mxu0  ;;  %v597_v16 = vpop.f32.mrf.mxu1 }
 0x14a   : > { %v512_v17 = vadd.f32 %v1955_v14, %v511_v15  ;;  %v2830_v18 = vmul.f32 0.59460354, %v597_v16 }
 0x14b   : > { %v2077_v19 = vpop.f32.mrf.mxu0  ;;  %v2088_v20 = vpop.f32.mrf.mxu1 }
 0x14c   : > { %v2832_v21 = vmul.f32 0.59460354, %v512_v17  ;;  %867 = vrot.lane.b32.xlu1 %v2830_v18, %s2546_s23  ;;  %2101 = vmatpush3.xpose.msk.msra.mxu0 %vm696_vm2, %v2830_v18 }
 0x14d   : > { %2120 = vmatprep.subr.mxu0 %v2544_v0 }
 0x14f   : > { %2103 = vmatmul.mubr.msk.f32.vlgmr.msra.gmra.mxu0 %vm696_vm2, %v2832_v21 }
 0x150   : > { %865 = vrot.lane.b32.xlu1 %v2832_v21, %s2546_s23  ;;  %2128 = vmatprep.mubr.msk.f32.mxu0 %vm2545_vm0, %v2544_v0 }
 0x159   : > { %v690_v23 = vpop.f32.mrf.mxu0 }
 0x15a   : > { %v2848_v24 = vadd.f32 %v1966_v22, %v690_v23 }
 0x15b   : > { %v2099_v25 = vpop.f32.mrf.mxu0 }
 0x15c   : > { %2106 = vmatpush3.msra.mxu1 %v2848_v24 }
 0x15d   : > { %2110 = vmatprep.subr.mxu1 %v2544_v0 }
 0x1be   : > { %v868_v39 = vpop.permute.xlu1 %867 }
 0x1c2   : > { %v866_v41 = vpop.permute.xlu1 %865 }
 0x20f   : > { %v769_v26 = vpop.f32.mrf.mxu0 }
 0x210   : > { %773 = vst.msk [vmem:[%s2853_s22] sm:$0xff] %vm696_vm2, %v769_v26  ;;  %v774_v27 = vsel %vm696_vm2, %v769_v26, -inf }
 0x211   : > { %775 = vmax.xlane.f32.xlu0 %v774_v27  ;;  %v2104_v28 = vpop.f32.mrf.mxu0 }
 0x29a   : > { %v776_v29 = vpop.xlane.xlu0 %775 }
 0x29b   : > { %v777_v30 = vsub.f32 %v769_v26, %v776_v29 }
 0x29d   : > { %v778_v31 = vmul.f32 1.442695, %v777_v30 }
 0x29f   : > { %2285 = vpow2.f32 %v778_v31 }
 0x2ac   : > { %v2286_v32 = vpop.eup %2285 }
 0x2ad   : > { %v780_v33 = vsel %vm696_vm2, %v2286_v32, 0.0 }
 0x2ae   : > { %781 = vadd.xlane.f32.xlu0 %v780_v33 }
 0x337   : > { %v782_v34 = vpop.xlane.xlu0 %781 }
 0x338   : > { %2287 = vrcp.f32 %v782_v34 }
 0x345   : > { %v2288_v35 = vpop.eup %2287 }
 0x346   : > { %v784_v36 = vmul.f32 %v2288_v35, %v782_v34 }
 0x348   : > { %v785_v37 = vsub.f32 2.0, %v784_v36 }
 0x34a   : > { %v786_v38 = vmul.f32 %v2288_v35, %v785_v37 }
 0x34c   : > { %v787_v40 = vmul.f32 %v2286_v32, %v786_v38 }
 0x34e   : > { %2108 = vmatmul.mubr.msk.f32.vlgmr.msra.gmra.mxu1 %vm696_vm2, %v787_v40 }
 0x34f   : > { %2111 = vmatpush3.xpose.msk.msra.mxu1 %vm696_vm2, %v868_v39  ;;  %2112 = vmatprep.mubr.msk.f32.mxu1 %vm2545_vm0, %v2544_v0 }
 0x350   : > { %2115 = vmatprep.subr.mxu1 %v2544_v0 }
 0x352   : > { %2113 = vmatmul.mubr.msk.f32.vlgmr.msra.gmra.mxu1 %vm696_vm2, %v866_v41 }
 0x353   : > { %2117 = vmatprep.mubr.msk.f32.mxu1 %vm2545_vm0, %v2544_v0 }
 0x40e   : > { %v857_v42 = vpop.f32.mrf.mxu1 }
 0x410   : > { %v2109_v43 = vpop.f32.mrf.mxu1 }
 0x412   : > { %v939_v44 = vpop.f32.mrf.mxu1 }
 0x413   : > { %1977 = vst.msk [vmem:[%s2853_s22 + $0x8] sm:$0xff] %vm696_vm2, %v939_v44  ;;  %v945_v45 = vsel %vm696_vm2, %v939_v44, -inf }
 0x414   : > { %946 = vmax.xlane.f32.xlu0 %v945_v45  ;;  %v2114_v46 = vpop.f32.mrf.mxu1 }
 0x42a   : > { %960 = vrot.lane.b32.xlu0 %v2848_v24, %s2546_s23 }
 0x42e   : > { %1050 = vrot.lane.b32.xlu0 %v2872_v47, %s2546_s23 }
 0x432   : > { %1048 = vrot.lane.b32.xlu0 %v2876_v48, %s2546_s23 }
 0x436   : > { %1046 = vrot.lane.b32.xlu0 %v2880_v49, %s2546_s23 }
 0x43a   : > { %1220 = vrot.lane.b32.xlu0 %v2830_v18, %s2547_s21 }
 0x43e   : > { %1218 = vrot.lane.b32.xlu0 %v2832_v21, %s2547_s21 }
 0x49d   : > { %v947_v50 = vpop.xlane.xlu0 %946 }
 0x49e   : > { %v948_v51 = vsub.f32 %v939_v44, %v947_v50 }
 0x4a0   : > { %v949_v52 = vmul.f32 1.442695, %v948_v51 }
 0x4a1   : > { %v961_v53 = vpop.permute.xlu0 %960 }
 0x4a2   : > { %2289 = vpow2.f32 %v949_v52  ;;  %2116 = vmatpush3.msra.mxu1 %v961_v53 }
 0x4a3   : > { %2131 = vmatprep.subr.mxu1 %v2544_v0 }
 0x4a5   : > { %v1051_v54 = vpop.permute.xlu0 %1050 }
 0x4a6   : > { %2121 = vmatpush3.xpose.msk.msra.mxu0 %vm696_vm2, %v1051_v54 }
 0x4a7   : > { %2122 = vmatprep.subr.mxu0 %v2544_v0 }
 0x4a9   : > { %v1049_v55 = vpop.permute.xlu0 %1048 }
 0x4aa   : > { %2123 = vmatpush3.xpose.msk.msra.mxu0 %vm696_vm2, %v1049_v55 }
 0x4ab   : > { %2124 = vmatprep.subr.mxu0 %v2544_v0 }
 0x4ad   : > { %v1047_v56 = vpop.permute.xlu0 %1046 }
 0x4ae   : > { %2125 = vmatpush3.xpose.msk.msra.mxu0 %vm696_vm2, %v1047_v56 }
 0x4af   : > { %v2290_v57 = vpop.eup %2289  ;;  %2126 = vmatprep.subr.mxu0 %v2544_v0 }
 0x4b0   : > { %v951_v58 = vsel %vm696_vm2, %v2290_v57, 0.0 }
 0x4b1   : > { %952 = vadd.xlane.f32.xlu1 %v951_v58  ;;  %v1221_v4 = vpop.permute.xlu0 %1220 }
 0x4b5   : > { %v1219_v7 = vpop.permute.xlu0 %1218 }
 0x4c2   : > { %1044 = vrot.lane.b32.xlu1 %v2896_v59, %s2546_s23  ;;  %s2549_s23 = smov [#allocation12]  }
 0x4c3   : > { %s2437_s25 = sshll.u32 %s2549_s23, 4  ;;  %s2438_s25 = int_to_ptr.vmem [resolvable:$false] %s2437_s25 }
 0x4c4   : > { %s2439_s27 = scalar_lea.vmem %s2438_s25, 1024  ;;  %p2440_p12 = scmp.lt.s32.totalorder %s2996_s19, %s2438_s25 }
 0x4c5   : > { %p2441_p2 = scmp.lt.s32.totalorder %s2439_s27, %s2433_s16 }
 0x4c7   : > { %p2442_p9 = por %p2441_p2, %p2440_p12 }
 0x4c9   : > { %p2443_p11 = pnand %p2442_p9, %p2436_p0 }
 0x53a   : > { %v953_v60 = vpop.xlane.xlu1 %952 }
 0x53b   : > { %2291 = vrcp.f32 %v953_v60 }
 0x53e   : > { %v1045_v2 = vpop.permute.xlu1 %1044 }
 0x53f   : > { %2127 = vmatpush3.xpose.msk.msra.mxu0 %vm696_vm2, %v1045_v2 }
 0x540   : > { %2142 = vmatprep.subr.mxu0 %v2544_v0 }
 0x548   : > { %v2292_v61 = vpop.eup %2291 }
 0x549   : > { %v955_v62 = vmul.f32 %v2292_v61, %v953_v60 }
 0x54b   : > { %v956_v63 = vsub.f32 2.0, %v955_v62 }
 0x54d   : > { %v957_v1 = vmul.f32 %v2292_v61, %v956_v63 }
 0x54f   : > { %v958_v3 = vmul.f32 %v2290_v57, %v957_v1 }
 0x551   : > { %2118 = vmatmul.mubr.msk.f32.vlgmr.msra.gmra.mxu1 %vm696_vm2, %v958_v3 }
 0x552   : > { %2132 = vmatpush3.xpose.msk.msra.mxu1 %vm696_vm2, %v2872_v47  ;;  %2139 = vmatprep.mubr.msk.f32.mxu1 %vm2545_vm0, %v2544_v0 }
 0x553   : > { %2133 = vmatprep.subr.mxu1 %v2544_v0 }
 0x556   : > { %2134 = vmatpush3.xpose.msk.msra.mxu1 %vm696_vm2, %v2876_v48 }
 0x557   : > { %2135 = vmatprep.subr.mxu1 %v2544_v0 }
 0x55a   : > { %2136 = vmatpush3.xpose.msk.msra.mxu1 %vm696_vm2, %v2880_v49 }
 0x55b   : > { %2137 = vmatprep.subr.mxu1 %v2544_v0 }
 0x55e   : > { %2138 = vmatpush3.xpose.msk.msra.mxu1 %vm696_vm2, %v2896_v59 }
 0x55f   : > { %2147 = vmatprep.subr.mxu1 %v2544_v0 }
 0x561   : > { %2140 = vmatmul.mubr.msk.f32.vlgmr.msra.gmra.mxu1 %vm696_vm2, %v857_v42 }
 0x562   : > { %2149 = vmatprep.mubr.msk.f32.mxu1 %vm2545_vm0, %v2544_v0 }
 0x611   : > { %v1032_v5 = vpop.f32.mrf.mxu1 }
 0x612   : > { %2129 = vmatmul.mubr.msk.f32.vlgmr.msra.gmra.mxu0 %vm696_vm2, %v1032_v5 }
 0x613   : > { %2143 = vmatpush3.xpose.msk.msra.mxu0 %vm696_vm2, %v1221_v4  ;;  %v2119_v6 = vpop.f32.mrf.mxu1  ;;  %2144 = vmatprep.mubr.msk.f32.mxu0 %vm2545_vm0, %v2544_v0 }
 0x614   : > { %2152 = vmatprep.subr.mxu0 %v2544_v0 }
 0x616   : > { %2145 = vmatmul.mubr.msk.f32.vlgmr.msra.gmra.mxu0 %vm696_vm2, %v1219_v7 }
 0x617   : > { %2160 = vmatprep.mubr.msk.f32.mxu0 %vm2545_vm0, %v2544_v0 }
 0x621   : > { %v2928_v8 = vpop.f32.mrf.mxu1 }
 0x623   : > { %v2141_v9 = vpop.f32.mrf.mxu1 }
 0x6d2   : > { %v2930_v10 = vpop.f32.mrf.mxu0 }
 0x6d3   : > { %v1215_v54 = vadd.f32 %v2928_v8, %v2930_v10 }
 0x6d4   : > { %v2130_v11 = vpop.f32.mrf.mxu0 }
 0x6d6   : > { %v1292_v12 = vpop.f32.mrf.mxu0 }
 0x6d7   : > { %1991 = vst.msk [vmem:[%s2853_s22 + $0x10] sm:$0xff] %vm696_vm2, %v1292_v12  ;;  %v1298_v13 = vsel %vm696_vm2, %v1292_v12, -inf }
 0x6d8   : > { %1299 = vmax.xlane.f32.xlu0 %v1298_v13  ;;  %v2146_v14 = vpop.f32.mrf.mxu0 }
 0x6ee   : > { %1312 = vrot.lane.b32.xlu0 %v2848_v24, %s2547_s21 }
 0x6f2   : > { %1486 = vrot.lane.b32.xlu0 %v2832_v21, %s2548_s18 }
 0x761   : > { %v1300_v15 = vpop.xlane.xlu0 %1299 }
 0x762   : > { %v1301_v16 = vsub.f32 %v1292_v12, %v1300_v15 }
 0x764   : > { %v1302_v17 = vmul.f32 1.442695, %v1301_v16 }
 0x765   : > { %v1313_v19 = vpop.permute.xlu0 %1312 }
 0x766   : > { %2293 = vpow2.f32 %v1302_v17  ;;  %2148 = vmatpush3.msra.mxu1 %v1313_v19 }
 0x767   : > { %2163 = vmatprep.subr.mxu1 %v2544_v0 }
 0x769   : > { %v1487_v30 = vpop.permute.xlu0 %1486 }
 0x773   : > { %v2294_v20 = vpop.eup %2293 }
 0x774   : > { %v1304_v22 = vsel %vm696_vm2, %v2294_v20, 0.0 }
 0x775   : > { %1305 = vadd.xlane.f32.xlu1 %v1304_v22 }
 0x786   : > { %1488 = vrot.lane.b32.xlu1 %v2830_v18, %s2548_s18 }
 0x7fe   : > { %v1306_v23 = vpop.xlane.xlu1 %1305 }
 0x7ff   : > { %2295 = vrcp.f32 %v1306_v23 }
 0x802   : > { %v1489_v29 = vpop.permute.xlu1 %1488 }
 0x80c   : > { %v2296_v25 = vpop.eup %2295 }
 0x80d   : > { %v1308_v21 = vmul.f32 %v2296_v25, %v1306_v23 }
 0x80f   : > { %v1309_v26 = vsub.f32 2.0, %v1308_v21 }
 0x811   : > { %v1310_v27 = vmul.f32 %v2296_v25, %v1309_v26 }
 0x813   : > { %v1311_v28 = vmul.f32 %v2294_v20, %v1310_v27 }
 0x815   : > { %2150 = vmatmul.mubr.msk.f32.vlgmr.msra.gmra.mxu1 %vm696_vm2, %v1311_v28 }
 0x816   : > { %2164 = vmatpush3.xpose.msk.msra.mxu1 %vm696_vm2, %v1489_v29  ;;  %2165 = vmatprep.mubr.msk.f32.mxu1 %vm2545_vm0, %v2544_v0 }
 0x817   : > { %2168 = vmatprep.subr.mxu1 %v2544_v0 }
 0x819   : > { %2166 = vmatmul.mubr.msk.f32.vlgmr.msra.gmra.mxu1 %vm696_vm2, %v1487_v30 }
 0x81a   : > { %2170 = vmatprep.mubr.msk.f32.mxu1 %vm2545_vm0, %v2544_v0 }
 0x8d5   : > { %v1384_v18 = vpop.f32.mrf.mxu1 }
 0x8d7   : > { %v2151_v31 = vpop.f32.mrf.mxu1 }
 0x8d9   : > { %v1560_v32 = vpop.f32.mrf.mxu1 }
 0x8da   : > { %2000 = vst.msk [vmem:[%s2853_s22 + $0x18] sm:$0xff] %vm696_vm2, %v1560_v32  ;;  %v1566_v33 = vsel %vm696_vm2, %v1560_v32, -inf }
 0x8db   : > { %1567 = vmax.xlane.f32.xlu0 %v1566_v33  ;;  %v2167_v34 = vpop.f32.mrf.mxu1 }
 0x8f1   : > { %1580 = vrot.lane.b32.xlu0 %v2848_v24, %s2548_s18 }
 0x8f5   : > { %1670 = vrot.lane.b32.xlu0 %v2872_v47, %s2548_s18 }
 0x8f9   : > { %1668 = vrot.lane.b32.xlu0 %v2876_v48, %s2548_s18 }
 0x8fd   : > { %1666 = vrot.lane.b32.xlu0 %v2880_v49, %s2548_s18 }
 0x901   : > { %1664 = vrot.lane.b32.xlu0 %v2896_v59, %s2548_s18 }
 0x964   : > { %v1568_v35 = vpop.xlane.xlu0 %1567 }
 0x965   : > { %v1569_v36 = vsub.f32 %v1560_v32, %v1568_v35 }
 0x967   : > { %v1570_v37 = vmul.f32 1.442695, %v1569_v36 }
 0x968   : > { %v1581_v38 = vpop.permute.xlu0 %1580 }
 0x969   : > { %2297 = vpow2.f32 %v1570_v37  ;;  %2169 = vmatpush3.msra.mxu1 %v1581_v38 }
 0x96a   : > { %2173 = vmatprep.subr.mxu1 %v2544_v0 }
 0x96c   : > { %v1671_v46 = vpop.permute.xlu0 %1670 }
 0x970   : > { %v1669_v51 = vpop.permute.xlu0 %1668 }
 0x974   : > { %v1667_v52 = vpop.permute.xlu0 %1666 }
 0x976   : > { %v2298_v24 = vpop.eup %2297 }
 0x977   : > { %v1572_v39 = vsel %vm696_vm2, %v2298_v24, 0.0 }
 0x978   : > { %1573 = vadd.xlane.f32.xlu1 %v1572_v39  ;;  %v1665_v53 = vpop.permute.xlu0 %1664 }
 0x989   : > { %1402 = vrot.lane.b32.xlu1 %v2872_v47, %s2547_s21 }
 0x98d   : > { %1400 = vrot.lane.b32.xlu1 %v2876_v48, %s2547_s21 }
 0x991   : > { %1398 = vrot.lane.b32.xlu1 %v2880_v49, %s2547_s21 }
 0x995   : > { %1396 = vrot.lane.b32.xlu1 %v2896_v59, %s2547_s21 }
 0xa01   : > { %v1574_v40 = vpop.xlane.xlu1 %1573 }
 0xa02   : > { %2299 = vrcp.f32 %v1574_v40 }
 0xa05   : > { %v1403_v41 = vpop.permute.xlu1 %1402 }
 0xa06   : > { %2153 = vmatpush3.xpose.msk.msra.mxu0 %vm696_vm2, %v1403_v41 }
 0xa07   : > { %2154 = vmatprep.subr.mxu0 %v2544_v0 }
 0xa09   : > { %v1401_v42 = vpop.permute.xlu1 %1400 }
 0xa0a   : > { %2155 = vmatpush3.xpose.msk.msra.mxu0 %vm696_vm2, %v1401_v42 }
 0xa0b   : > { %2156 = vmatprep.subr.mxu0 %v2544_v0 }
 0xa0d   : > { %v1399_v43 = vpop.permute.xlu1 %1398 }
 0xa0e   : > { %2157 = vmatpush3.xpose.msk.msra.mxu0 %vm696_vm2, %v1399_v43 }
 0xa0f   : > { %v2300_v44 = vpop.eup %2299  ;;  %2158 = vmatprep.subr.mxu0 %v2544_v0 }
 0xa10   : > { %v1576_v45 = vmul.f32 %v2300_v44, %v1574_v40 }
 0xa11   : > { %v1397_v47 = vpop.permute.xlu1 %1396 }
 0xa12   : > { %v1577_v48 = vsub.f32 2.0, %v1576_v45  ;;  %2159 = vmatpush3.xpose.msk.msra.mxu0 %vm696_vm2, %v1397_v47 }
 0xa14   : > { %v1578_v49 = vmul.f32 %v2300_v44, %v1577_v48 }
 0xa15   : > { %2161 = vmatmul.mubr.msk.f32.vlgmr.msra.gmra.mxu0 %vm696_vm2, %v1384_v18 }
 0xa16   : > { %v1579_v50 = vmul.f32 %v2298_v24, %v1578_v49 }
 0xa18   : > { %2171 = vmatmul.mubr.msk.f32.vlgmr.msra.gmra.mxu1 %vm696_vm2, %v1579_v50 }
 0xa19   : > { %2174 = vmatpush3.xpose.msk.msra.mxu1 %vm696_vm2, %v1671_v46  ;;  %2181 = vmatprep.mubr.msk.f32.mxu1 %vm2545_vm0, %v2544_v0 }
 0xa1a   : > { %2175 = vmatprep.subr.mxu1 %v2544_v0 }
 0xa1d   : > { %2176 = vmatpush3.xpose.msk.msra.mxu1 %vm696_vm2, %v1669_v51 }
 0xa1e   : > { %2177 = vmatprep.subr.mxu1 %v2544_v0 }
 0xa21   : > { %2178 = vmatpush3.xpose.msk.msra.mxu1 %vm696_vm2, %v1667_v52 }
 0xa22   : > { %2179 = vmatprep.subr.mxu1 %v2544_v0 }
 0xa25   : > { %2180 = vmatpush3.xpose.msk.msra.mxu1 %vm696_vm2, %v1665_v53 }
 0xad5   : > { %v1481_v55 = vpop.f32.mrf.mxu0 }
 0xad6   : > { %v1485_v56 = vadd.f32 %v1481_v55, %v1215_v54 }
 0xad7   : > { %v2162_v57 = vpop.f32.mrf.mxu0 }
 0xad8   : > { %v1652_v58 = vpop.f32.mrf.mxu1 }
 0xad9   : > { %2182 = vmatmul.mubr.msk.f32.vlgmr.msra.gmra.mxu1 %vm696_vm2, %v1652_v58 }
 0xada   : > { %v2172_v59 = vpop.f32.mrf.mxu1 }
 0xadb   : > { %2446 = shalt.err (!%p2443_p11)
}
 0xadc   : > { %s2447_s28 = scalar_lea.hbm %s3002_s6, 512  ;;  %s2451_s18 = scalar_lea.hbm %s3077_s9, 1024 }
 0xadd   : > { %p2448_p13 = scmp.ne.s32.totalorder %s3002_s6, %s2447_s28  ;;  %p2452_p4 = scmp.lt.s32.totalorder %s3002_s6, %s3077_s9 }
 0xade   : > { %p2453_p6 = scmp.lt.s32.totalorder %s2451_s18, %s2447_s28 }
 0xadf   : > { %p2449_p1 = pnand %p2448_p13, %p3103_p7 }
 0xae0   : > { %p2454_p5 = por %p2453_p6, %p2452_p4 }
 0xae1   : > { %p2450_p3 = pneg %p2449_p1 }
 0xae3   : > { %p2455_p8 = pnand %p2454_p5, %p2450_p3 }
 0xae5   : > { %2458 = shalt.err (!%p2455_p8)
}
 0xae6   : > { %s2550_s4 = smov 128   ;;  %s2551_s16 = smov 8   ;;  %v2007_v60 = vld [vmem:[%s3075_s7] ss:$0 sm:$0xff] }
 0xae7   : > { %2203 = dma.vmem_to_hbm [thread:$0]  (%p3103_p7), %s2996_s19, 512, %s3002_s6, %s1769_s1, %s2550_s4, %s2550_s4, %s2551_s16  }
 0xae8   : > { %s2010_s27 = sshll.u32 %s2624_s15, 7  ;;  %s409_s28 = scalar_lea.vmem [#allocation11], %s1948_s20 }
 0xae9   : > { %s1782_s22 = sshll.u32 %s409_s28, 4  ;;  %s1780_s13 = scalar_lea.hbm %s3076_s8, %s2010_s27  ;;  %s1783_s22 = int_to_ptr.vmem [resolvable:$true] %s1782_s22 }
 0xaea   : > { %s1764_s19 = scalar_lea.sflag [#allocation4], %s2767_s3  ;;  %s2459_s6 = scalar_lea.vmem %s1783_s22, 128 }
 0xaeb   : > { %p2460_p10 = scmp.ne.s32.totalorder %s1783_s22, %s2459_s6  ;;  %s2552_s15 = smov [#allocation11]  }
 0xaec   : > { %s2463_s1 = sshll.u32 %s2552_s15, 4  ;;  %s2464_s1 = int_to_ptr.vmem [resolvable:$false] %s2463_s1 }
 0xaed   : > { %p2461_p0 = pnand %p2460_p10, %p3103_p7  ;;  %s2465_s20 = scalar_lea.vmem %s2464_s1, 256 }
 0xaee   : > { %p2466_p2 = scmp.lt.s32.totalorder %s1783_s22, %s2464_s1  ;;  %p2467_p9 = scmp.lt.s32.totalorder %s2465_s20, %s2459_s6 }
 0xaef   : > { %p2462_p12 = pneg %p2461_p0 }
 0xaf0   : > { %p2468_p11 = por %p2467_p9, %p2466_p2 }
 0xaf2   : > { %p2469_p13 = pnand %p2468_p11, %p2462_p12 }
 0xb99   : > { %v1749_v0 = vpop.f32.mrf.mxu1 }
 0xb9a   : > { %v1753_v61 = vadd.f32 %v1749_v0, %v1485_v56 }
 0xb9b   : > { %v2183_v62 = vpop.f32.mrf.mxu1 }
 0xb9c   : > { %v1761_v63 = vadd.f32 %v2007_v60, %v1753_v61 }
 0xb9e   : > { %1762 = vst.msk [vmem:[%s409_s28] sm:$0xff] %vm429_vm1, %v1761_v63 }
 0xb9f   : > { %2472 = shalt.err (!%p2469_p13)
}
 0xba0   : > { %s2473_s24 = scalar_lea.hbm %s1780_s13, 128  ;;  %s2477_s16 = scalar_lea.hbm %s3076_s8, 256 }
 0xba1   : > { %p2474_p1 = scmp.ne.s32.totalorder %s1780_s13, %s2473_s24  ;;  %p2478_p6 = scmp.lt.s32.totalorder %s1780_s13, %s3076_s8 }
 0xba2   : > { %p2479_p5 = scmp.lt.s32.totalorder %s2477_s16, %s2473_s24 }
 0xba3   : > { %p2475_p3 = pnand %p2474_p1, %p3103_p7 }
 0xba4   : > { %p2480_p8 = por %p2479_p5, %p2478_p6 }
 0xba5   : > { %p2476_p4 = pneg %p2475_p3 }
 0xba7   : > { %p2481_p10 = pnand %p2480_p8, %p2476_p4 }
 0xba9   : > { %2484 = shalt.err (!%p2481_p10)
}
 0xbaa   : > { %2202 = dma.vmem_to_hbm [thread:$0]  (%p3103_p7), %s1783_s22, 128, %s1780_s13, %s1764_s19  }
 0xbab PF: > { %s1810_s27 = sand.u32 1, %s2523_s30   ;;  %p3104_p0 = scmp.ne.s32.totalorder %s3095_s17, 0 }
 0xbac   : > { %p3105_p12 = scmp.ge.s32.totalorder %s2535_s12, 2  ;;  %s1811_s28 = scalar_lea.sflag [#allocation4], %s1810_s27 }
 0xbae   : > { %p2224_p2 = pnand %p3105_p12, %p3104_p0 }
 0xbb0   : > { %p2225_p9 = pneg %p2224_p2 }
 0xbb2   : > { %2514 = dma.done.wait (%p2225_p9), %s1811_s28, 128  }
 0xbb3   : > { %2516 = vsyncadd (%p2225_p9), %s1811_s28, 4294967168  ;;  %s1820_s21 = scalar_lea.sflag [#allocation13], %s1810_s27 }
 0xbb4   : > { %2518 = dma.done.wait (%p2225_p9), %s1820_s21, 512  }
 0xbb5   : > { %2520 = vsyncadd (%p2225_p9), %s1820_s21, 4294966784  ;;  %p28_p7 = scmp.ge.s32.totalorder %s2704_s26, 4   ;;  %s3106_s30 = smov %s2527_s10 }
 0xbb6   : > { %s3107_s10 = smov %s2531_s11  ;;  %s3108_s11 = smov %s2715_s29 }
 0xbb7   : > { %s3109_s12 = smov %s2704_s26  ;;  %30 = sbr.rel (!%p28_p7) target bundleno = 14 (0xe), region = 133 }
 0xbbc   :  { %1825 = vsyncpa [#allocation3], 1 }
 0xbbd   :  { %1827 = vsyncpa [#allocation3 + $0x1], 1 }
 0xbbe   :  { %1828 = vsyncpa [#allocation6], 1 }
 0xbbf   :  { %1829 = vsyncpa [#allocation9], 1 }
 0xbc0   :  { %1830 = vsyncpa [#allocation4], 1 }
 0xbc1   :  { %1832 = vsyncpa [#allocation4 + $0x1], 1 }
 0xbc2   :  { %1833 = vsyncpa [#allocation13], 1 }
 0xbc3   :  { %1835 = vsyncpa [#allocation13 + $0x1], 1 }

</bundles_post_ra>
